<compile_context>
chip_gen: v6e
topology: v6e:2x2x1
jax: 0.10.0
libtpu: 0.0.40
codegen_flags: <defaults>
</compile_context>

<pallas_src>
import jax
import jax.numpy as jnp
from jax.experimental import pallas as pl
from jax.experimental.pallas import tpu as pltpu

_LANE = 128
_SUBLANE = 8


def _round_up(n: int, m: int) -> int:
    return ((n + m - 1) // m) * m


def _pad2(x, rows, cols):
    r, c = x.shape
    return jnp.pad(x, ((0, rows - r), (0, cols - c)))


def _make_forward(E, Cs, Ee, Ce, Hp, n_w_rows):
    """Build the fused forward for static feature widths (slab offsets baked into the kernel)."""
    off_w1s = 0                 # static-context rows of W1
    off_w1a = Ce                # per-action rows of W1
    off_wpool = Ce + Ee         # Wp @ W1_pool (pool fused through the projector)
    off_w2 = Ce + 2 * Ee        # W2

    def kernel(actions_ref, ctx_ref, w_ref, b_ref, out_ref):
        actions = actions_ref[...]                                       # [A, Ee]

        # 1) DeepSet sum-pool (projector already folded into the weight slab at init).
        pool = jnp.sum(actions, axis=0, keepdims=True)                   # [1, Ee]

        # 2) Shared context row: ctx @ W1_static + pool @ (Wp @ W1_pool) + b1.
        ctx_h = (
            jnp.dot(ctx_ref[...], w_ref[off_w1s:off_w1s + Ce, :],
                    preferred_element_type=jnp.float32)
            + jnp.dot(pool, w_ref[off_wpool:off_wpool + Ee, :],
                      preferred_element_type=jnp.float32)
            + b_ref[0:1, :])                                             # [1, Hp]

        # 3) Per-action hidden1 + ReLU  (== relu(hidden1(cat([context, action_i])))).
        h1 = jnp.maximum(
            jnp.dot(actions, w_ref[off_w1a:off_w1a + Ee, :],
                    preferred_element_type=jnp.float32) + ctx_h, 0.0)    # [A, Hp]

        # 4) hidden2 + ReLU.
        h2 = jnp.maximum(
            jnp.dot(h1, w_ref[off_w2:off_w2 + Hp, :],
                    preferred_element_type=jnp.float32) + b_ref[1:2, :], 0.0)  # [A, Hp]

        # 5) Final layer: one logit per action (VPU mul + lane reduce). The final bias is
        #    dropped: a constant shift of every logit is a softmax no-op.
        logits = jnp.sum(h2 * b_ref[2:3, :], axis=1, keepdims=True)      # [A, 1]

        # 6) Numerically-stable softmax over the action set; EUP reciprocal for the denom.
        m = jnp.max(logits, axis=0, keepdims=True)
        e = jnp.exp(logits - m)
        inv = pl.reciprocal(jnp.sum(e, axis=0, keepdims=True), approx=True)
        out_ref[...] = jnp.broadcast_to(e * inv, out_ref.shape)          # [A, 128] lane-dense

    def forward(w_slab, b_slab, instruction, state, previous_action, actions, step):
        A = actions.shape[0]
        actions_p = jnp.pad(actions.astype(jnp.float32), ((0, 0), (0, Ee - E)))
        ctx = jnp.concatenate(
            [instruction, state, previous_action, step]).astype(jnp.float32)
        ctx_p = jnp.pad(ctx, (0, Ce - Cs))[None, :]                      # [1, Ce]

        out = pl.pallas_call(
            kernel,
            out_shape=jax.ShapeDtypeStruct((A, _LANE), jnp.float32),
            grid_spec=pltpu.PrefetchScalarGridSpec(
                num_scalar_prefetch=0,
                grid=(1,),
                in_specs=[
                    pl.BlockSpec((A, Ee), lambda i: (0, 0)),             # actions
                    pl.BlockSpec((1, Ce), lambda i: (0, 0)),             # static-context row
                    pl.BlockSpec((n_w_rows, Hp), lambda i: (0, 0)),      # packed weight slab
                    pl.BlockSpec((3, Hp), lambda i: (0, 0)),             # packed [b1; b2; wf]
                ],
                out_specs=pl.BlockSpec((A, _LANE), lambda i: (0, 0)),
            ),
            compiler_params=pltpu.CompilerParams(
                dimension_semantics=("arbitrary",),
                vmem_limit_bytes=32 * 1024 * 1024,
            ),
        )(actions_p, ctx_p, w_slab, b_slab)

        return out[:, 0]                                                 # [A] distribution

    return forward


def _linear_init(key, fan_in, fan_out, bias=True):
    kw, kb = jax.random.split(key)
    bound = 1.0 / (fan_in ** 0.5)
    w = jax.random.uniform(kw, (fan_in, fan_out), jnp.float32, -bound, bound)
    b = jax.random.uniform(kb, (fan_out,), jnp.float32, -bound, bound) if bias else None
    return w, b


class DeepSetActionCritic:
    """JAX/Pallas re-implementation of the PyTorch DeepSetActionCritic forward pass."""

    def __init__(self, instruction_embedding, state_embedding, action_embedding,
                 n_step, net_params, key):
        P = net_params["action_projection"]
        H1, H2 = net_params["hidden1_out"], net_params["hidden2_out"]
        assert H1 == H2, "reference hidden2 uses hidden2_out for in AND out features"
        E = action_embedding
        Cs = instruction_embedding + state_embedding + E + n_step
        in_features = Cs + P + E    # width forward() actually produces (see TODO at top)

        k = jax.random.split(key, 4)
        wp, _ = _linear_init(k[0], E, P, bias=False)
        w1, b1 = _linear_init(k[1], in_features, H1)
        w2, b2 = _linear_init(k[2], H1, H1)
        wf, bf = _linear_init(k[3], H1, 1)
        # Raw params in the reference layout, kept for the pure-JAX parity check.
        self.params = {"wp": wp, "w1": w1, "b1": b1, "w2": w2, "b2": b2,
                       "wf": wf[:, 0], "bf": bf[0]}

        # ---- One-time weight preprocessing (hoisted out of the per-call path) ----
        Ee = _round_up(E, _SUBLANE)       # contraction dims: sublane-only padding
        Ce = _round_up(Cs, _SUBLANE)
        Hp = _round_up(H1, _LANE)         # lane dims: 128-aligned

        w1_static = w1[:Cs]               # [Cs, H] rows multiplying the static context
        w1_pool = w1[Cs:Cs + P]           # [P,  H] rows multiplying the pooled projection
        w1_act = w1[Cs + P:]              # [E,  H] rows multiplying each action
        w_pool = wp @ w1_pool             # [E,  H] pool fused through the projector

        w_slab = jnp.concatenate([
            _pad2(w1_static, Ce, Hp),     # rows [0, Ce)
            _pad2(w1_act, Ee, Hp),        # rows [Ce, Ce+Ee)
            _pad2(w_pool, Ee, Hp),        # rows [Ce+Ee, Ce+2Ee)
            _pad2(w2, Hp, Hp),            # rows [Ce+2Ee, Ce+2Ee+Hp)
        ], axis=0).astype(jnp.float32)    # [Ce + 2*Ee + Hp, Hp]

        b_slab = jnp.stack([
            jnp.pad(b1, (0, Hp - H1)),
            jnp.pad(b2, (0, Hp - H1)),
            jnp.pad(wf[:, 0], (0, Hp - H1)),
        ], axis=0).astype(jnp.float32)    # [3, Hp]   (final bias dropped: softmax no-op)

        self._w_slab = w_slab
        self._b_slab = b_slab
        self._fwd = jax.jit(_make_forward(E, Cs, Ee, Ce, Hp, int(w_slab.shape[0])))

    def __call__(self, instruction, state, previous_action, actions, step):
        return self._fwd(self._w_slab, self._b_slab,
                         instruction, state, previous_action, actions, step)

    forward = __call__


def reference_forward(params, instruction, state, previous_action, actions, step):
    """Pure-JAX reference implementing the PyTorch forward (concat-then-matmul form)."""
    proj = actions @ params["wp"]                                   # [A, P]
    pool = proj.sum(axis=0)                                         # [P]
    context = jnp.concatenate([instruction, state, previous_action, step, pool])
    A = actions.shape[0]
    c = jnp.broadcast_to(context[None, :], (A, context.shape[0]))
    x = jnp.concatenate([c, actions], axis=1)
    h1 = jax.nn.relu(x @ params["w1"] + params["b1"])
    h2 = jax.nn.relu(h1 @ params["w2"] + params["b2"])
    logits = h2 @ params["wf"] + params["bf"]                       # [A]
    return jax.nn.softmax(logits)


if __name__ == "__main__":
    key = jax.random.PRNGKey(0)

    # Small shapes consistent with the module.
    I, S, E, T, P, H, A = 32, 16, 32, 4, 16, 64, 8
    net_params = {"action_projection": P, "hidden1_out": H, "hidden2_out": H}

    k_mod, k_in = jax.random.split(key)
    critic = DeepSetActionCritic(I, S, E, T, net_params, key=k_mod)

    k1, k2, k3, k4 = jax.random.split(k_in, 4)
    instruction = jax.random.normal(k1, (I,), jnp.float32)
    state = jax.random.normal(k2, (S,), jnp.float32)
    previous_action = jax.random.normal(k3, (E,), jnp.float32)
    actions = jax.random.normal(k4, (A, E), jnp.float32)
    step = jax.nn.one_hot(1, T, dtype=jnp.float32)                  # n_step encoding

    dist = critic(instruction, state, previous_action, actions, step)
    dist = jax.block_until_ready(dist)

    ref = reference_forward(critic.params, instruction, state, previous_action, actions, step)

    assert dist.shape == (A,) and dist.dtype == jnp.float32
    # Tolerances account for the (mathematically exact) pool-through-projector reassociation,
    # the dropped final bias, and the approx EUP reciprocal in the softmax.
    assert bool(jnp.allclose(jnp.sum(dist), 1.0, atol=2e-3))
    assert bool(jnp.allclose(dist, ref, rtol=2e-3, atol=1e-5)), (dist, ref)

    print("KERNEL_OK")
</pallas_src>

<mosaic_0001>
module attributes {stable_mosaic.version = 11 : i64} {
  func.func @kernel(%arg0: i32, %arg1: memref<8x32xf32, #tpu.memory_space<vmem>>, %arg2: memref<1x88xf32, #tpu.memory_space<vmem>>, %arg3: memref<280x128xf32, #tpu.memory_space<vmem>>, %arg4: memref<3x128xf32, #tpu.memory_space<vmem>>, %arg5: memref<8x128xf32, #tpu.memory_space<vmem>>) attributes {dimension_semantics = [#tpu.dimension_semantics<arbitrary>], iteration_bounds = array<i64: 1>, scalar_prefetch = 0 : i64, scratch_operands = 0 : i64, tpu.core_type = #tpu.core_type<tc>, window_params = [{pipeline_mode = #tpu.pipeline_mode<synchronous>, transform_indices = @transform_0, window_bounds = array<i64: 8, 32>}, {pipeline_mode = #tpu.pipeline_mode<synchronous>, transform_indices = @transform_1, window_bounds = array<i64: 1, 88>}, {pipeline_mode = #tpu.pipeline_mode<synchronous>, transform_indices = @transform_2, window_bounds = array<i64: 280, 128>}, {pipeline_mode = #tpu.pipeline_mode<synchronous>, transform_indices = @transform_3, window_bounds = array<i64: 3, 128>}, {pipeline_mode = #tpu.pipeline_mode<synchronous>, transform_indices = @transform_4, window_bounds = array<i64: 8, 128>}]} {
    %c0 = arith.constant 0 : index
    %c0_0 = arith.constant 0 : index
    %0 = vector.load %arg1[%c0, %c0_0] : memref<8x32xf32, #tpu.memory_space<vmem>>, vector<8x32xf32>
    %cst = arith.constant dense<0.000000e+00> : vector<32xf32>
    %1 = vector.multi_reduction <add>, %0, %cst [0] : vector<8x32xf32> to vector<32xf32>
    %2 = vector.shape_cast %1 : vector<32xf32> to vector<1x32xf32>
    %c0_1 = arith.constant 0 : index
    %c0_2 = arith.constant 0 : index
    %3 = vector.load %arg2[%c0_1, %c0_2] : memref<1x88xf32, #tpu.memory_space<vmem>>, vector<1x88xf32>
    %c0_3 = arith.constant 0 : index
    %c0_4 = arith.constant 0 : index
    %4 = vector.load %arg3[%c0_3, %c0_4] : memref<280x128xf32, #tpu.memory_space<vmem>>, vector<88x128xf32>
    %cst_5 = arith.constant dense<0.000000e+00> : vector<1x128xf32>
    %5 = tpu.matmul %3, %4, %cst_5 {dimension_numbers = #tpu.dot_dimension_numbers<[1], [0], [0], [1], [0, 0, 1, 1], [], []>} : vector<1x88xf32>, vector<88x128xf32>, vector<1x128xf32> -> vector<1x128xf32>
    %c120 = arith.constant 120 : index
    %c0_6 = arith.constant 0 : index
    %6 = vector.load %arg3[%c120, %c0_6] : memref<280x128xf32, #tpu.memory_space<vmem>>, vector<32x128xf32>
    %cst_7 = arith.constant dense<0.000000e+00> : vector<1x128xf32>
    %7 = tpu.matmul %2, %6, %cst_7 {dimension_numbers = #tpu.dot_dimension_numbers<[1], [0], [0], [1], [0, 0, 1, 1], [], []>} : vector<1x32xf32>, vector<32x128xf32>, vector<1x128xf32> -> vector<1x128xf32>
    %8 = arith.addf %5, %7 : vector<1x128xf32>
    %c0_8 = arith.constant 0 : index
    %c0_9 = arith.constant 0 : index
    %9 = vector.load %arg4[%c0_8, %c0_9] : memref<3x128xf32, #tpu.memory_space<vmem>>, vector<1x128xf32>
    %10 = arith.addf %8, %9 : vector<1x128xf32>
    %c88 = arith.constant 88 : index
    %c0_10 = arith.constant 0 : index
    %11 = vector.load %arg3[%c88, %c0_10] : memref<280x128xf32, #tpu.memory_space<vmem>>, vector<32x128xf32>
    %cst_11 = arith.constant dense<0.000000e+00> : vector<8x128xf32>
    %12 = tpu.matmul %0, %11, %cst_11 {dimension_numbers = #tpu.dot_dimension_numbers<[1], [0], [0], [1], [0, 0, 1, 1], [], []>} : vector<8x32xf32>, vector<32x128xf32>, vector<8x128xf32> -> vector<8x128xf32>
    %13 = vector.broadcast %10 : vector<1x128xf32> to vector<8x128xf32>
    %14 = arith.addf %12, %13 : vector<8x128xf32>
    %cst_12 = arith.constant 0.000000e+00 : f32
    %15 = vector.broadcast %cst_12 : f32 to vector<8x128xf32>
    %16 = arith.maximumf %14, %15 : vector<8x128xf32>
    %c152 = arith.constant 152 : index
    %c0_13 = arith.constant 0 : index
    %17 = vector.load %arg3[%c152, %c0_13] : memref<280x128xf32, #tpu.memory_space<vmem>>, vector<128x128xf32>
    %cst_14 = arith.constant dense<0.000000e+00> : vector<8x128xf32>
    %18 = tpu.matmul %16, %17, %cst_14 {dimension_numbers = #tpu.dot_dimension_numbers<[1], [0], [0], [1], [0, 0, 1, 1], [], []>} : vector<8x128xf32>, vector<128x128xf32>, vector<8x128xf32> -> vector<8x128xf32>
    %c1 = arith.constant 1 : index
    %c0_15 = arith.constant 0 : index
    %19 = vector.load %arg4[%c1, %c0_15] : memref<3x128xf32, #tpu.memory_space<vmem>>, vector<1x128xf32>
    %20 = vector.broadcast %19 : vector<1x128xf32> to vector<8x128xf32>
    %21 = arith.addf %18, %20 : vector<8x128xf32>
    %cst_16 = arith.constant 0.000000e+00 : f32
    %22 = vector.broadcast %cst_16 : f32 to vector<8x128xf32>
    %23 = arith.maximumf %21, %22 : vector<8x128xf32>
    %c2 = arith.constant 2 : index
    %c0_17 = arith.constant 0 : index
    %24 = vector.load %arg4[%c2, %c0_17] : memref<3x128xf32, #tpu.memory_space<vmem>>, vector<1x128xf32>
    %25 = vector.broadcast %24 : vector<1x128xf32> to vector<8x128xf32>
    %26 = arith.mulf %23, %25 : vector<8x128xf32>
    %cst_18 = arith.constant dense<0.000000e+00> : vector<8xf32>
    %27 = vector.multi_reduction <add>, %26, %cst_18 [1] : vector<8x128xf32> to vector<8xf32>
    %28 = vector.shape_cast %27 : vector<8xf32> to vector<8x1xf32>
    %cst_19 = arith.constant dense<0xFF800000> : vector<1xf32>
    %29 = vector.multi_reduction <maximumf>, %28, %cst_19 [0] : vector<8x1xf32> to vector<1xf32>
    %30 = vector.shape_cast %29 : vector<1xf32> to vector<1x1xf32>
    %31 = vector.broadcast %30 : vector<1x1xf32> to vector<8x1xf32>
    %32 = arith.subf %28, %31 : vector<8x1xf32>
    %33 = math.exp %32 : vector<8x1xf32>
    %cst_20 = arith.constant dense<0.000000e+00> : vector<1xf32>
    %34 = vector.multi_reduction <add>, %33, %cst_20 [0] : vector<8x1xf32> to vector<1xf32>
    %35 = vector.shape_cast %34 : vector<1xf32> to vector<1x1xf32>
    %36 = tpu.reciprocal %35 {approx = true} : vector<1x1xf32> -> vector<1x1xf32>
    %37 = vector.broadcast %36 : vector<1x1xf32> to vector<8x1xf32>
    %38 = arith.mulf %33, %37 : vector<8x1xf32>
    %39 = vector.shape_cast %38 : vector<8x1xf32> to vector<8x1xf32>
    %40 = vector.broadcast %39 : vector<8x1xf32> to vector<8x128xf32>
    %c0_21 = arith.constant 0 : index
    %c0_22 = arith.constant 0 : index
    %41 = vector.load %arg5[%c0_21, %c0_22] : memref<8x128xf32, #tpu.memory_space<vmem>>, vector<8x128xf32>
    tpu.vector_store %arg5[%c0_21, %c0_22], %40 {strides = array<i32>} : memref<8x128xf32, #tpu.memory_space<vmem>>, vector<8x128xf32>,
    return
  }
  func.func @transform_0(%arg0: i32) -> (i32, i32) {
    %c0_i32 = arith.constant 0 : i32
    %c0_i32_0 = arith.constant 0 : i32
    %c0_i32_1 = arith.constant 0 : i32
    return %c0_i32, %c0_i32_0 : i32, i32
  }
  func.func @transform_1(%arg0: i32) -> (i32, i32) {
    %c0_i32 = arith.constant 0 : i32
    %c0_i32_0 = arith.constant 0 : i32
    %c0_i32_1 = arith.constant 0 : i32
    return %c0_i32, %c0_i32_0 : i32, i32
  }
  func.func @transform_2(%arg0: i32) -> (i32, i32) {
    %c0_i32 = arith.constant 0 : i32
    %c0_i32_0 = arith.constant 0 : i32
    %c0_i32_1 = arith.constant 0 : i32
    return %c0_i32, %c0_i32_0 : i32, i32
  }
  func.func @transform_3(%arg0: i32) -> (i32, i32) {
    %c0_i32 = arith.constant 0 : i32
    %c0_i32_0 = arith.constant 0 : i32
    %c0_i32_1 = arith.constant 0 : i32
    return %c0_i32, %c0_i32_0 : i32, i32
  }
  func.func @transform_4(%arg0: i32) -> (i32, i32) {
    %c0_i32 = arith.constant 0 : i32
    %c0_i32_0 = arith.constant 0 : i32
    %c0_i32_1 = arith.constant 0 : i32
    return %c0_i32, %c0_i32_0 : i32, i32
  }
}

</mosaic_0001>

<bundles_post_ra>
// kernel: forward.1
= control target key start
LH: loop header
LB: loop body
LE: loop exit
PB: predicated region body
PF: predicated region fallthrough
CT: control target
= control target key end

     0   :  { %9 = vsyncpa [#allocation3], 0  ;;  %s567_s15 = smov [#allocation2]   ;;  %s668_s0 = inlined_call_operand.vmem [shape: f32[8,32], index: 0, kind: input, shape index: {}]   ;;  %s669_s1 = inlined_call_operand.vmem [shape: f32[1,88], index: 1, kind: input, shape index: {}]   ;;  %s670_s2 = inlined_call_operand.hbm [shape: f32[280,128], index: 2, kind: input, shape index: {}]   ;;  %s671_s3 = inlined_call_operand.vmem [shape: f32[3,128], index: 3, kind: input, shape index: {}]   ;;  %s672_s4 = inlined_call_operand.vmem [shape: f32[8,128], index: 4, kind: output, shape index: {}]  }
   0x1   :  { %s19_s16 = sshll.u32 %s567_s15, 4  ;;  %s20_s16 = int_to_ptr.vmem [resolvable:$true] %s19_s16 }
   0x2   :  { %s553_s17 = scalar_lea.vmem %s20_s16, 4480  ;;  %p558_p1 = scmp.lt.s32.totalorder %s20_s16, %s20_s16 }
   0x3   :  { %p554_p0 = scmp.ne.s32.totalorder %s20_s16, %s553_s17  ;;  %p559_p2 = scmp.lt.s32.totalorder %s553_s17, %s553_s17 }
   0x5   :  { %p560_p3 = por %p559_p2, %p558_p1 }
   0x7   :  { %p561_p4 = pnand %p560_p3, %p554_p0 }
   0x9   :  { %564 = shalt.err (!%p561_p4)
}
   0xa   :  { %s568_s18 = smov 128   ;;  %s569_s19 = smov 8  }
   0xb   :  { %25 = dma.hbm_to_vmem [thread:$0]  %s670_s2, 4480, %s20_s16, [#allocation3], %s568_s18, %s568_s18, %s569_s19  }
   0xc   :  { %565 = dma.done.wait [#allocation3], 4480  }
   0xd   :  { %566 = vsyncadd [#allocation3], 4294962816  ;;  %v570_v0 = vmov 0.0   ;;  %vm571_vm0 = vmmov 0   ;;  %vm32_vm1 = vcmask 261120   ;;  %v55_v1 = vld [vmem:[#allocation2 + $0x90] sm:$0xff]  ;;  %v209_v47 = vlaneseq }
   0xe   :  { %454 = vmatprep.subr.mxu1 %v570_v0  ;;  %462 = vmatprep.mubr.msk.f32.mxu1 %vm571_vm0, %v570_v0  ;;  %v54_v2 = vld [vmem:[#allocation2 + $0x88] sm:$0xff]  ;;  %v609_v3 = vld [vmem:[%s668_s0] sm:$0xff]  ;;  %v52_v7 = vld [vmem:[#allocation2 + $0x78] sm:$0xff]  ;;  %vm129_vm2 = vcmask 719872  }
   0xf   :  { %501 = vmatprep.subr.mxu0 %v570_v0  ;;  %533 = vmatprep.mubr.msk.f32.mxu0 %vm571_vm0, %v570_v0  ;;  %v53_v4 = vld [vmem:[#allocation2 + $0x80] sm:$0xff]  ;;  %v33_v5 = vsel %vm32_vm1, %v609_v3, 0.0  ;;  %v51_v13 = vld [vmem:[#allocation2 + $0x50] sm:$0xff]  ;;  %v50_v14 = vld [vmem:[#allocation2 + $0x48] sm:$0xff]  ;;  %v210_v48 = vshrl.u32 %v209_v47, 7 }
  0x10   :  { %455 = vmatpush3.msra.mxu1 %v55_v1  ;;  %v34_v6 = vrot.slane %v33_v5, 4  ;;  %v49_v15 = vld [vmem:[#allocation2 + $0x40] sm:$0xff]  ;;  %v48_v16 = vld [vmem:[#allocation2 + $0x38] sm:$0xff]  ;;  %v47_v17 = vld [vmem:[#allocation2 + $0x30] sm:$0xff] }
  0x11   :  { %456 = vmatprep.subr.mxu1 %v570_v0  ;;  %v46_v18 = vld [vmem:[#allocation2 + $0x28] sm:$0xff]  ;;  %v45_v19 = vld [vmem:[#allocation2 + $0x20] sm:$0xff]  ;;  %v44_v20 = vld [vmem:[#allocation2 + $0x18] sm:$0xff]  ;;  %v211_v54 = vsub.s32 0, %v210_v48 }
  0x12   :  { %457 = vmatpush3.msra.mxu1 %v54_v2  ;;  %v35_v8 = vadd.f32 %v34_v6, %v33_v5  ;;  %v43_v21 = vld [vmem:[#allocation2 + $0x10] sm:$0xff]  ;;  %v42_v22 = vld [vmem:[#allocation2 + $0x8] sm:$0xff]  ;;  %v41_v23 = vld [vmem:[#allocation2] sm:$0xff] }
  0x13   :  { %458 = vmatprep.subr.mxu1 %v570_v0  ;;  %v40_v24 = vld [vmem:[%s669_s1] sm:$0x1]  ;;  %v208_v25 = vld [vmem:[#allocation2 + $0x70] sm:$0xff]  ;;  %v207_v26 = vld [vmem:[#allocation2 + $0x68] sm:$0xff] }
  0x14   :  { %459 = vmatpush3.msra.mxu1 %v53_v4  ;;  %v36_v9 = vrot.slane %v35_v8, 2  ;;  %v206_v27 = vld [vmem:[#allocation2 + $0x60] sm:$0xff]  ;;  %v205_v28 = vld [vmem:[#allocation2 + $0x58] sm:$0xff]  ;;  %v302_v29 = vld [vmem:[#allocation2 + $0x110] sm:$0xff] }
  0x15   :  { %460 = vmatprep.subr.mxu1 %v570_v0  ;;  %v301_v30 = vld [vmem:[#allocation2 + $0x108] sm:$0xff]  ;;  %502 = vmatpush3.msra.mxu0 %v302_v29  ;;  %v300_v31 = vld [vmem:[#allocation2 + $0x100] sm:$0xff]  ;;  %v299_v32 = vld [vmem:[#allocation2 + $0xf8] sm:$0xff] }
  0x16   :  { %461 = vmatpush3.msra.mxu1 %v52_v7  ;;  %v37_v10 = vadd.f32 %v36_v9, %v35_v8  ;;  %503 = vmatprep.subr.mxu0 %v570_v0  ;;  %v298_v33 = vld [vmem:[#allocation2 + $0xf0] sm:$0xff]  ;;  %v297_v34 = vld [vmem:[#allocation2 + $0xe8] sm:$0xff]  ;;  %v296_v35 = vld [vmem:[#allocation2 + $0xe0] sm:$0xff] }
  0x17   :  { %465 = vmatprep.subr.mxu1 %v570_v0  ;;  %504 = vmatpush3.msra.mxu0 %v301_v30  ;;  %v295_v36 = vld [vmem:[#allocation2 + $0xd8] sm:$0xff]  ;;  %v294_v37 = vld [vmem:[#allocation2 + $0xd0] sm:$0xff]  ;;  %v293_v38 = vld [vmem:[#allocation2 + $0xc8] sm:$0xff] }
  0x18   :  { %v38_v11 = vrot.slane %v37_v10, 1  ;;  %505 = vmatprep.subr.mxu0 %v570_v0  ;;  %v292_v39 = vld [vmem:[#allocation2 + $0xc0] sm:$0xff]  ;;  %v291_v40 = vld [vmem:[#allocation2 + $0xb8] sm:$0xff]  ;;  %v290_v41 = vld [vmem:[#allocation2 + $0xb0] sm:$0xff] }
  0x19   :  { %506 = vmatpush3.msra.mxu0 %v300_v31  ;;  %v289_v42 = vld [vmem:[#allocation2 + $0xa8] sm:$0xff]  ;;  %v288_v43 = vld [vmem:[#allocation2 + $0xa0] sm:$0xff]  ;;  %v287_v44 = vld [vmem:[#allocation2 + $0x98] sm:$0xff] }
  0x1a   :  { %v39_v12 = vadd.f32 %v38_v11, %v37_v10  ;;  %507 = vmatprep.subr.mxu0 %v570_v0  ;;  %v203_v50 = vld [vmem:[%s671_s3] sm:$0x1]  ;;  %v413_v60 = vld [vmem:[%s671_s3 + $0x1] ss:$0 sm:$0xff] }
  0x1b   :  { %508 = vmatpush3.msra.mxu0 %v299_v32 }
  0x1c   :  { %463 = vmatmul.mubr.msk.f32.vlgmr.msra.gmra.mxu1 %vm32_vm1, %v39_v12  ;;  %509 = vmatprep.subr.mxu0 %v570_v0 }
  0x1d   :  { %466 = vmatpush3.msra.mxu1 %v51_v13  ;;  %487 = vmatprep.mubr.msk.f32.mxu1 %vm571_vm0, %v570_v0 }
  0x1e   :  { %467 = vmatprep.subr.mxu1 %v570_v0  ;;  %510 = vmatpush3.msra.mxu0 %v298_v33 }
  0x1f   :  { %468 = vmatpush3.msra.mxu1 %v50_v14  ;;  %511 = vmatprep.subr.mxu0 %v570_v0 }
  0x20   :  { %469 = vmatprep.subr.mxu1 %v570_v0  ;;  %512 = vmatpush3.msra.mxu0 %v297_v34 }
  0x21   :  { %470 = vmatpush3.msra.mxu1 %v49_v15  ;;  %513 = vmatprep.subr.mxu0 %v570_v0 }
  0x22   :  { %471 = vmatprep.subr.mxu1 %v570_v0  ;;  %514 = vmatpush3.msra.mxu0 %v296_v35 }
  0x23   :  { %472 = vmatpush3.msra.mxu1 %v48_v16  ;;  %515 = vmatprep.subr.mxu0 %v570_v0 }
  0x24   :  { %473 = vmatprep.subr.mxu1 %v570_v0  ;;  %516 = vmatpush3.msra.mxu0 %v295_v36 }
  0x25   :  { %474 = vmatpush3.msra.mxu1 %v47_v17  ;;  %517 = vmatprep.subr.mxu0 %v570_v0 }
  0x26   :  { %475 = vmatprep.subr.mxu1 %v570_v0  ;;  %518 = vmatpush3.msra.mxu0 %v294_v37 }
  0x27   :  { %476 = vmatpush3.msra.mxu1 %v46_v18  ;;  %519 = vmatprep.subr.mxu0 %v570_v0 }
  0x28   :  { %477 = vmatprep.subr.mxu1 %v570_v0  ;;  %520 = vmatpush3.msra.mxu0 %v293_v38 }
  0x29   :  { %478 = vmatpush3.msra.mxu1 %v45_v19  ;;  %521 = vmatprep.subr.mxu0 %v570_v0 }
  0x2a   :  { %479 = vmatprep.subr.mxu1 %v570_v0  ;;  %522 = vmatpush3.msra.mxu0 %v292_v39 }
  0x2b   :  { %480 = vmatpush3.msra.mxu1 %v44_v20  ;;  %523 = vmatprep.subr.mxu0 %v570_v0 }
  0x2c   :  { %481 = vmatprep.subr.mxu1 %v570_v0  ;;  %524 = vmatpush3.msra.mxu0 %v291_v40 }
  0x2d   :  { %482 = vmatpush3.msra.mxu1 %v43_v21  ;;  %525 = vmatprep.subr.mxu0 %v570_v0 }
  0x2e   :  { %483 = vmatprep.subr.mxu1 %v570_v0  ;;  %526 = vmatpush3.msra.mxu0 %v290_v41 }
  0x2f   :  { %484 = vmatpush3.msra.mxu1 %v42_v22  ;;  %527 = vmatprep.subr.mxu0 %v570_v0 }
  0x30   :  { %485 = vmatprep.subr.mxu1 %v570_v0  ;;  %528 = vmatpush3.msra.mxu0 %v289_v42 }
  0x31   :  { %486 = vmatpush3.msra.mxu1 %v41_v23  ;;  %529 = vmatprep.subr.mxu0 %v570_v0 }
  0x32   :  { %488 = vmatmul.mubr.msk.f32.vlgmr.msra.gmra.mxu1 %vm129_vm2, %v40_v24  ;;  %490 = vmatprep.subr.mxu1 %v570_v0 }
  0x33   :  { %491 = vmatpush3.msra.mxu1 %v208_v25  ;;  %498 = vmatprep.mubr.msk.f32.mxu1 %vm571_vm0, %v570_v0 }
  0x34   :  { %492 = vmatprep.subr.mxu1 %v570_v0  ;;  %530 = vmatpush3.msra.mxu0 %v288_v43 }
  0x35   :  { %493 = vmatpush3.msra.mxu1 %v207_v26  ;;  %531 = vmatprep.subr.mxu0 %v570_v0 }
  0x36   :  { %494 = vmatprep.subr.mxu1 %v570_v0  ;;  %532 = vmatpush3.msra.mxu0 %v287_v44 }
  0x37   :  { %495 = vmatpush3.msra.mxu1 %v206_v27 }
  0x38   :  { %496 = vmatprep.subr.mxu1 %v570_v0  ;;  %v414_v0 = vld [vmem:[%s671_s3 + $0x2] ss:$0 sm:$0xff] }
  0x39   :  { %497 = vmatpush3.msra.mxu1 %v205_v28 }
  0x3a   :  { %499 = vmatmul.mubr.msk.f32.vlgmr.msra.gmra.mxu1 %vm32_vm1, %v609_v3 }
  0xdc   :  { %v125_v45 = vpop.f32.mrf.mxu1 }
  0xde   :  { %v464_v46 = vpop.f32.mrf.mxu1 }
  0xf2   :  { %v199_v49 = vpop.f32.mrf.mxu1 }
  0xf3   :  { %v200_v51 = vadd.f32 %v199_v49, %v125_v45 }
  0xf4   :  { %v489_v52 = vpop.f32.mrf.mxu1 }
  0xf5   :  { %v204_v53 = vadd.f32 %v203_v50, %v200_v51 }
  0xf7   :  { %v212_v55 = vrot.slane %v204_v53, %v211_v54 }
  0xfa   :  { %v282_v56 = vpop.f32.mrf.mxu1 }
  0xfb   :  { %v283_v57 = vadd.f32 %v282_v56, %v212_v55 }
  0xfc   :  { %v500_v58 = vpop.f32.mrf.mxu1 }
  0xfd   :  { %v286_v59 = vmax.f32 %v283_v57, 0.0 }
  0xff   :  { %534 = vmatmul.mubr.f32.vlgmr.msra.gmra.mxu0 %v286_v59 }
 0x1bf   :  { %v374_v61 = vpop.f32.mrf.mxu0 }
 0x1c0   :  { %v375_v62 = vadd.f32 %v413_v60, %v374_v61 }
 0x1c1   :  { %v535_v63 = vpop.f32.mrf.mxu0 }
 0x1c2   :  { %v378_v1 = vmax.f32 %v375_v62, 0.0 }
 0x1c4   :  { %v384_v2 = vmul.f32 %v414_v0, %v378_v1 }
 0x1c6   :  { %385 = vadd.xlane.f32.xlu0 %v384_v2 }
 0x24f   :  { %v386_v3 = vpop.xlane.xlu0 %385 }
 0x250   :  { %v387_v4 = vrot.slane %v386_v3, 4 }
 0x252   :  { %v388_v5 = vmax.f32 %v386_v3, %v387_v4 }
 0x254   :  { %v389_v6 = vrot.slane %v388_v5, 2 }
 0x256   :  { %v390_v7 = vmax.f32 %v388_v5, %v389_v6 }
 0x258   :  { %v391_v8 = vrot.slane %v390_v7, 1 }
 0x25a   :  { %v392_v9 = vmax.f32 %v390_v7, %v391_v8 }
 0x25c   :  { %v393_v10 = vsub.f32 %v386_v3, %v392_v9 }
 0x25e   :  { %v394_v11 = vmul.f32 1.442695, %v393_v10 }
 0x260   :  { %541 = vpow2.f32 %v394_v11 }
 0x26d   :  { %v542_v12 = vpop.eup %541 }
 0x26e   :  { %v396_v13 = vrot.slane %v542_v12, 4 }
 0x270   :  { %v397_v14 = vadd.f32 %v542_v12, %v396_v13 }
 0x272   :  { %v398_v15 = vrot.slane %v397_v14, 2 }
 0x274   :  { %v399_v16 = vadd.f32 %v398_v15, %v397_v14 }
 0x276   :  { %v400_v17 = vrot.slane %v399_v16, 1 }
 0x278   :  { %v401_v18 = vadd.f32 %v400_v17, %v399_v16 }
 0x27a   :  { %543 = vrcp.f32 %v401_v18 }
 0x287   :  { %v544_v19 = vpop.eup %543 }
 0x288   :  { %v403_v20 = vmul.f32 %v544_v19, %v542_v12 }
 0x28a   :  { %404 = vst [vmem:[%s672_s4] sm:$0xff] %v403_v20 }
 0x28b   :  { %409 = vsyncpa [#allocation3], 1 }

</bundles_post_ra>
